<compile_context>
chip_gen: v7x
topology: tpu7x:2x2x1
jax: 0.10.0
libtpu: 0.0.40
codegen_flags: <defaults>
</compile_context>

<pallas_src>
import functools

import jax
import jax.numpy as jnp
from jax import lax
from jax.experimental import pallas as pl
from jax.experimental.pallas import tpu as pltpu


def gru_last_state_kernel(gates_ref, w_h3_hbm, last_ref, out_ref,
                          h_scr, w_scr, dma_sem):
    # gates_ref : (Tt, Bp, 3H) bf16   x-side gate pre-activations (biases folded in)
    # w_h3_hbm  : (H, 3H)       bf16  concatenated [W_hr^T | W_hi^T | W_hn^T], HBM (pl.ANY)
    # last_ref  : (Bp, 1)       int32 lengths - 1
    # out_ref   : (Bp, H)       f32   last valid hidden state (resident across grid)
    # h_scr     : (Bp, H)       f32   recurrent hidden state
    # w_scr     : (H, 3H)       bf16  single-buffered VMEM copy of w_h3
    tblk = pl.program_id(0)
    Tt = gates_ref.shape[0]
    H = h_scr.shape[1]

    @pl.when(tblk == 0)
    def _init():
        h_scr[...] = jnp.zeros_like(h_scr)
        out_ref[...] = jnp.zeros_like(out_ref)
        # One-time weight DMA (constant across the whole grid -> no double-buffer).
        cp = pltpu.make_async_copy(w_h3_hbm, w_scr, dma_sem)
        cp.start()
        cp.wait()

    w_h3 = w_scr[...]                      # (H, 3H) bf16, resident
    last = last_ref[...]                   # (Bp, 1) int32

    def step(tt, carry):
        h = h_scr[...]                                        # (Bp, H) f32
        g = gates_ref[tt].astype(jnp.float32)                 # (Bp, 3H) f32
        # Single fused MXU push for all three hidden-side gates, f32 accumulation.
        hw = jnp.dot(h.astype(jnp.bfloat16), w_h3,
                     preferred_element_type=jnp.float32)      # (Bp, 3H) f32

        r = jax.nn.sigmoid(g[:, 0:H] + hw[:, 0:H])
        i = jax.nn.sigmoid(g[:, H:2 * H] + hw[:, H:2 * H])
        n = jnp.tanh(g[:, 2 * H:3 * H] + r * hw[:, 2 * H:3 * H])
        h_new = (1.0 - i) * n + i * h                         # f32 elementwise (v5e-safe)
        h_scr[...] = h_new

        # Select-write: keep only the hidden state at step lengths[b]-1.
        t_global = tblk * Tt + tt
        out_ref[...] = jnp.where(last == t_global, h_new, out_ref[...])
        return carry

    lax.fori_loop(0, Tt, step, 0, unroll=True)


def bayesian_gru_last_state(gates_tbh, w_h3, last_step, *, tt_block=4,
                            vmem_limit_bytes=48 * 1024 * 1024):
    """gates_tbh: (T, B, 3H) bf16 gate pre-activations (x-side, biases folded in).
    w_h3: (H, 3H) bf16 concatenated hidden weights. last_step: (B,) int32 = lengths-1.
    Returns (B, H) f32: hidden state at the last valid timestep of each sequence."""
    T, B, H3 = gates_tbh.shape
    H = w_h3.shape[0]
    assert H3 == 3 * H

    # Pad T to a multiple of the per-grid-step time block (padded steps update h
    # but are never selected, since last_step < T).
    Tp = ((T + tt_block - 1) // tt_block) * tt_block
    if Tp != T:
        gates_tbh = jnp.pad(gates_tbh, ((0, Tp - T), (0, 0), (0, 0)))

    # Pad B to a multiple of 8 for sublane-dense stores of the (B, H) output.
    Bp = ((B + 7) // 8) * 8
    if Bp != B:
        gates_tbh = jnp.pad(gates_tbh, ((0, 0), (0, Bp - B), (0, 0)))
        last_step = jnp.pad(last_step, ((0, Bp - B),), constant_values=0)
    last_col = last_step.reshape(Bp, 1).astype(jnp.int32)

    out = pl.pallas_call(
        gru_last_state_kernel,
        out_shape=jax.ShapeDtypeStruct((Bp, H), jnp.float32),
        grid_spec=pltpu.PrefetchScalarGridSpec(
            num_scalar_prefetch=0,
            grid=(Tp // tt_block,),
            in_specs=[
                pl.BlockSpec((tt_block, Bp, H3), lambda t: (t, 0, 0)),  # gate block
                pl.BlockSpec(memory_space=pl.ANY),                      # W_h3 in HBM
                pl.BlockSpec((Bp, 1), lambda t: (0, 0)),                # lengths-1
            ],
            out_specs=pl.BlockSpec((Bp, H), lambda t: (0, 0)),          # resident output
            scratch_shapes=[
                pltpu.VMEM((Bp, H), jnp.float32),      # hidden state (f32 carry)
                pltpu.VMEM((H, H3), jnp.bfloat16),     # single-buffered weights
                pltpu.SemaphoreType.DMA,               # weight DMA semaphore
            ],
        ),
        compiler_params=pltpu.CompilerParams(
            dimension_semantics=("arbitrary",),        # sequential recurrence
            vmem_limit_bytes=vmem_limit_bytes,
        ),
    )(gates_tbh, w_h3, last_col)
    return out[:B]


def encoder_skip_thought_forward(inputs, lengths, params, *, tt_block=4):
    """inputs: (B, T) int32 token ids (0 = pad); lengths: (B,) int32.
    Returns (B, H): GRU hidden state at the last valid timestep of each sequence."""
    emb = params["embedding"][inputs]                       # (B, T, E); row 0 is zeros
    # x-side gates: one large, fully parallel matmul outside the recurrence,
    # with the input biases folded in.
    gates = jnp.einsum("bte,eg->btg", emb, params["w_i3_t"]) + params["bias3"]
    gates_tbh = jnp.transpose(gates, (1, 0, 2)).astype(jnp.bfloat16)   # (T, B, 3H)
    w_h3 = params["w_h3_t"].astype(jnp.bfloat16)                       # (H, 3H)
    last_step = (lengths - 1).astype(jnp.int32)
    return bayesian_gru_last_state(gates_tbh, w_h3, last_step, tt_block=tt_block)


def _reference_forward(inputs, lengths, params):
    """Pure-JAX f32 reference (lax.scan) for correctness check."""
    B, T = inputs.shape
    emb = params["embedding"][inputs]
    x_tbe = jnp.transpose(emb, (1, 0, 2))
    H = params["w_hr_t"].shape[0]

    def step(h, x):
        r = jax.nn.sigmoid(x @ params["w_ir_t"] + params["bias"][0]
                           + h @ params["w_hr_t"])
        i = jax.nn.sigmoid(x @ params["w_ii_t"] + params["bias"][1]
                           + h @ params["w_hi_t"])
        n = jnp.tanh(x @ params["w_in_t"] + params["bias"][2]
                     + r * (h @ params["w_hn_t"]))
        h_new = (1.0 - i) * n + i * h
        return h_new, h_new

    _, h_all = jax.lax.scan(step, jnp.zeros((B, H), jnp.float32), x_tbe)
    return h_all[lengths - 1, jnp.arange(B), :]


def make_params(key, vocab_size, embed_dim, hidden_dim):
    ks = jax.random.split(key, 10)
    emb = 0.1 * jax.random.normal(ks[0], (vocab_size + 1, embed_dim), jnp.float32)
    emb = emb.at[0].set(0.0)  # padding_idx=0

    def lin(k, n_in, n_out):
        # nn.Linear weight is (out, in); store transposed (in, out) for x @ W
        return 0.1 * jax.random.normal(k, (n_in, n_out), jnp.float32)

    w_ir_t = lin(ks[1], embed_dim, hidden_dim)
    w_ii_t = lin(ks[2], embed_dim, hidden_dim)
    w_in_t = lin(ks[3], embed_dim, hidden_dim)
    w_hr_t = lin(ks[4], hidden_dim, hidden_dim)
    w_hi_t = lin(ks[5], hidden_dim, hidden_dim)
    w_hn_t = lin(ks[6], hidden_dim, hidden_dim)
    bias = 0.1 * jax.random.normal(ks[7], (3, hidden_dim), jnp.float32)

    return {
        "embedding": emb,
        # individual f32 weights (reference path)
        "w_ir_t": w_ir_t, "w_ii_t": w_ii_t, "w_in_t": w_in_t,
        "w_hr_t": w_hr_t, "w_hi_t": w_hi_t, "w_hn_t": w_hn_t,
        "bias": bias,
        # fused layouts for the kernel path (gate order: r, i, n)
        "w_i3_t": jnp.concatenate([w_ir_t, w_ii_t, w_in_t], axis=1),   # (E, 3H)
        "w_h3_t": jnp.concatenate([w_hr_t, w_hi_t, w_hn_t], axis=1),   # (H, 3H)
        "bias3": bias.reshape(-1),                                     # (3H,)
    }


if __name__ == "__main__":
    # Small synthetic shapes (real skip-thoughts: E=620, H=2400).
    VOCAB, B, T, E, H = 50, 2, 8, 32, 32

    key = jax.random.PRNGKey(0)
    k_par, k_tok = jax.random.split(key)
    params = make_params(k_par, VOCAB, E, H)

    lengths = jnp.array([8, 5], dtype=jnp.int32)
    tokens = jax.random.randint(k_tok, (B, T), 1, VOCAB + 1, dtype=jnp.int32)
    pad_mask = jnp.arange(T)[None, :] < lengths[:, None]
    tokens = jnp.where(pad_mask, tokens, 0)   # 0 = padding token

    out = encoder_skip_thought_forward(tokens, lengths, params, tt_block=4)
    out = jax.block_until_ready(out)

    ref = _reference_forward(tokens, lengths, params)
    assert out.shape == (B, H)
    # bf16 weights / gate tensor in the kernel -> bf16-appropriate tolerance.
    assert jnp.allclose(out, ref, atol=2e-2, rtol=2e-2), "mismatch vs JAX reference"

    print("KERNEL_OK")
</pallas_src>

<mosaic_0001>
module attributes {stable_mosaic.version = 11 : i64} {
  func.func @gru_last_state_kernel(%arg0: i32, %arg1: memref<4x8x96xbf16, #tpu.memory_space<vmem>>, %arg2: memref<32x96xbf16, #tpu.memory_space<any>>, %arg3: memref<8x1xi32, #tpu.memory_space<vmem>>, %arg4: memref<8x32xf32, #tpu.memory_space<vmem>>, %arg5: memref<8x32xf32, #tpu.memory_space<vmem>>, %arg6: memref<32x96xbf16, #tpu.memory_space<vmem>>, %arg7: memref<!tpu.dma_semaphore, #tpu.memory_space<semaphore_mem>>) attributes {dimension_semantics = [#tpu.dimension_semantics<arbitrary>], iteration_bounds = array<i64: 2>, scalar_prefetch = 0 : i64, scratch_operands = 3 : i64, tpu.core_type = #tpu.core_type<tc>, window_params = [{transform_indices = @transform_0, window_bounds = array<i64: 4, 8, 96>}, {}, {pipeline_mode = #tpu.pipeline_mode<synchronous>, transform_indices = @transform_2, window_bounds = array<i64: 8, 1>}, {pipeline_mode = #tpu.pipeline_mode<synchronous>, transform_indices = @transform_3, window_bounds = array<i64: 8, 32>}]} {
    %c0_i32 = arith.constant 0 : i32
    %0 = arith.cmpi eq, %arg0, %c0_i32 : i32
    %1 = arith.extui %0 : i1 to i32
    %c0_i32_0 = arith.constant 0 : i32
    %2 = arith.cmpi ne, %1, %c0_i32_0 : i32
    scf.if %2 {
      %cst_64 = arith.constant 0.000000e+00 : f32
      %177 = vector.broadcast %cst_64 : f32 to vector<8x32xf32>
      %c0_65 = arith.constant 0 : index
      %c0_66 = arith.constant 0 : index
      %178 = vector.load %arg5[%c0_65, %c0_66] : memref<8x32xf32, #tpu.memory_space<vmem>>, vector<8x32xf32>
      tpu.vector_store %arg5[%c0_65, %c0_66], %177 {strides = array<i32>} : memref<8x32xf32, #tpu.memory_space<vmem>>, vector<8x32xf32>,
      %cst_67 = arith.constant 0.000000e+00 : f32
      %179 = vector.broadcast %cst_67 : f32 to vector<8x32xf32>
      %c0_68 = arith.constant 0 : index
      %c0_69 = arith.constant 0 : index
      %180 = vector.load %arg4[%c0_68, %c0_69] : memref<8x32xf32, #tpu.memory_space<vmem>>, vector<8x32xf32>
      tpu.vector_store %arg4[%c0_68, %c0_69], %179 {strides = array<i32>} : memref<8x32xf32, #tpu.memory_space<vmem>>, vector<8x32xf32>,
      tpu.enqueue_dma source(%arg2 : memref<32x96xbf16, #tpu.memory_space<any>>) target(%arg6 : memref<32x96xbf16, #tpu.memory_space<vmem>>) target_semaphore(%arg7 : memref<!tpu.dma_semaphore, #tpu.memory_space<semaphore_mem>>)
      tpu.wait_dma2 semaphore(%arg7 : memref<!tpu.dma_semaphore, #tpu.memory_space<semaphore_mem>>) src(%arg2 : memref<32x96xbf16, #tpu.memory_space<any>>) dst(%arg6 : memref<32x96xbf16, #tpu.memory_space<vmem>>)
    } else {
    }
    %c0 = arith.constant 0 : index
    %c0_1 = arith.constant 0 : index
    %3 = vector.load %arg6[%c0, %c0_1] : memref<32x96xbf16, #tpu.memory_space<vmem>>, vector<32x96xbf16>
    %c0_2 = arith.constant 0 : index
    %c0_3 = arith.constant 0 : index
    %4 = vector.load %arg3[%c0_2, %c0_3] : memref<8x1xi32, #tpu.memory_space<vmem>>, vector<8x1xi32>
    %c0_i32_4 = arith.constant 0 : i32
    %c0_5 = arith.constant 0 : index
    %c0_6 = arith.constant 0 : index
    %5 = vector.load %arg5[%c0_5, %c0_6] : memref<8x32xf32, #tpu.memory_space<vmem>>, vector<8x32xf32>
    %6 = arith.index_cast %c0_i32_4 : i32 to index
    %c0_7 = arith.constant 0 : index
    %c0_8 = arith.constant 0 : index
    %7 = vector.load %arg1[%6, %c0_7, %c0_8] : memref<4x8x96xbf16, #tpu.memory_space<vmem>>, vector<1x8x96xbf16>
    %8 = vector.shape_cast %7 : vector<1x8x96xbf16> to vector<8x96xbf16>
    %9 = arith.extf %8 : vector<8x96xbf16> to vector<8x96xf32>
    %10 = arith.truncf %5 : vector<8x32xf32> to vector<8x32xbf16>
    %cst = arith.constant dense<0.000000e+00> : vector<8x96xf32>
    %11 = tpu.matmul %10, %3, %cst {dimension_numbers = #tpu.dot_dimension_numbers<[1], [0], [0], [1], [0, 0, 1, 1], [], []>} : vector<8x32xbf16>, vector<32x96xbf16>, vector<8x96xf32> -> vector<8x96xf32>
    %12 = vector.extract_strided_slice %9 {offsets = [0, 0], sizes = [8, 32], strides = [1, 1]} : vector<8x96xf32> to vector<8x32xf32>
    %13 = vector.extract_strided_slice %11 {offsets = [0, 0], sizes = [8, 32], strides = [1, 1]} : vector<8x96xf32> to vector<8x32xf32>
    %14 = arith.addf %12, %13 : vector<8x32xf32>
    %15 = arith.negf %14 : vector<8x32xf32>
    %16 = math.exp %15 : vector<8x32xf32>
    %cst_9 = arith.constant 1.000000e+00 : f32
    %17 = vector.broadcast %cst_9 : f32 to vector<8x32xf32>
    %18 = arith.addf %17, %16 : vector<8x32xf32>
    %19 = arith.divf %17, %18 : vector<8x32xf32>
    %20 = vector.extract_strided_slice %9 {offsets = [0, 32], sizes = [8, 32], strides = [1, 1]} : vector<8x96xf32> to vector<8x32xf32>
    %21 = vector.extract_strided_slice %11 {offsets = [0, 32], sizes = [8, 32], strides = [1, 1]} : vector<8x96xf32> to vector<8x32xf32>
    %22 = arith.addf %20, %21 : vector<8x32xf32>
    %23 = arith.negf %22 : vector<8x32xf32>
    %24 = math.exp %23 : vector<8x32xf32>
    %cst_10 = arith.constant 1.000000e+00 : f32
    %25 = vector.broadcast %cst_10 : f32 to vector<8x32xf32>
    %26 = arith.addf %25, %24 : vector<8x32xf32>
    %27 = arith.divf %25, %26 : vector<8x32xf32>
    %28 = vector.extract_strided_slice %9 {offsets = [0, 64], sizes = [8, 32], strides = [1, 1]} : vector<8x96xf32> to vector<8x32xf32>
    %29 = vector.extract_strided_slice %11 {offsets = [0, 64], sizes = [8, 32], strides = [1, 1]} : vector<8x96xf32> to vector<8x32xf32>
    %30 = arith.mulf %19, %29 : vector<8x32xf32>
    %31 = arith.addf %28, %30 : vector<8x32xf32>
    %32 = math.tanh %31 : vector<8x32xf32>
    %cst_11 = arith.constant 1.000000e+00 : f32
    %33 = vector.broadcast %cst_11 : f32 to vector<8x32xf32>
    %34 = arith.subf %33, %27 : vector<8x32xf32>
    %35 = arith.mulf %34, %32 : vector<8x32xf32>
    %36 = arith.mulf %27, %5 : vector<8x32xf32>
    %37 = arith.addf %35, %36 : vector<8x32xf32>
    %c0_12 = arith.constant 0 : index
    %c0_13 = arith.constant 0 : index
    %38 = vector.load %arg5[%c0_12, %c0_13] : memref<8x32xf32, #tpu.memory_space<vmem>>, vector<8x32xf32>
    tpu.vector_store %arg5[%c0_12, %c0_13], %37 {strides = array<i32>} : memref<8x32xf32, #tpu.memory_space<vmem>>, vector<8x32xf32>,
    %c4_i32 = arith.constant 4 : i32
    %39 = arith.muli %arg0, %c4_i32 : i32
    %40 = arith.addi %39, %c0_i32_4 : i32
    %41 = vector.broadcast %40 : i32 to vector<8x1xi32>
    %42 = arith.cmpi eq, %4, %41 : vector<8x1xi32>
    %c0_14 = arith.constant 0 : index
    %c0_15 = arith.constant 0 : index
    %43 = vector.load %arg4[%c0_14, %c0_15] : memref<8x32xf32, #tpu.memory_space<vmem>>, vector<8x32xf32>
    %44 = vector.shape_cast %42 : vector<8x1xi1> to vector<8x1xi1>
    %45 = vector.broadcast %44 : vector<8x1xi1> to vector<8x32xi1>
    %46 = arith.select %45, %37, %43 : vector<8x32xi1>, vector<8x32xf32>
    %c0_16 = arith.constant 0 : index
    %c0_17 = arith.constant 0 : index
    %47 = vector.load %arg4[%c0_16, %c0_17] : memref<8x32xf32, #tpu.memory_space<vmem>>, vector<8x32xf32>
    tpu.vector_store %arg4[%c0_16, %c0_17], %46 {strides = array<i32>} : memref<8x32xf32, #tpu.memory_space<vmem>>, vector<8x32xf32>,
    %c1_i32 = arith.constant 1 : i32
    %c0_18 = arith.constant 0 : index
    %c0_19 = arith.constant 0 : index
    %48 = vector.load %arg5[%c0_18, %c0_19] : memref<8x32xf32, #tpu.memory_space<vmem>>, vector<8x32xf32>
    %49 = arith.index_cast %c1_i32 : i32 to index
    %c0_20 = arith.constant 0 : index
    %c0_21 = arith.constant 0 : index
    %50 = vector.load %arg1[%49, %c0_20, %c0_21] : memref<4x8x96xbf16, #tpu.memory_space<vmem>>, vector<1x8x96xbf16>
    %51 = vector.shape_cast %50 : vector<1x8x96xbf16> to vector<8x96xbf16>
    %52 = arith.extf %51 : vector<8x96xbf16> to vector<8x96xf32>
    %53 = arith.truncf %48 : vector<8x32xf32> to vector<8x32xbf16>
    %cst_22 = arith.constant dense<0.000000e+00> : vector<8x96xf32>
    %54 = tpu.matmul %53, %3, %cst_22 {dimension_numbers = #tpu.dot_dimension_numbers<[1], [0], [0], [1], [0, 0, 1, 1], [], []>} : vector<8x32xbf16>, vector<32x96xbf16>, vector<8x96xf32> -> vector<8x96xf32>
    %55 = vector.extract_strided_slice %52 {offsets = [0, 0], sizes = [8, 32], strides = [1, 1]} : vector<8x96xf32> to vector<8x32xf32>
    %56 = vector.extract_strided_slice %54 {offsets = [0, 0], sizes = [8, 32], strides = [1, 1]} : vector<8x96xf32> to vector<8x32xf32>
    %57 = arith.addf %55, %56 : vector<8x32xf32>
    %58 = arith.negf %57 : vector<8x32xf32>
    %59 = math.exp %58 : vector<8x32xf32>
    %cst_23 = arith.constant 1.000000e+00 : f32
    %60 = vector.broadcast %cst_23 : f32 to vector<8x32xf32>
    %61 = arith.addf %60, %59 : vector<8x32xf32>
    %62 = arith.divf %60, %61 : vector<8x32xf32>
    %63 = vector.extract_strided_slice %52 {offsets = [0, 32], sizes = [8, 32], strides = [1, 1]} : vector<8x96xf32> to vector<8x32xf32>
    %64 = vector.extract_strided_slice %54 {offsets = [0, 32], sizes = [8, 32], strides = [1, 1]} : vector<8x96xf32> to vector<8x32xf32>
    %65 = arith.addf %63, %64 : vector<8x32xf32>
    %66 = arith.negf %65 : vector<8x32xf32>
    %67 = math.exp %66 : vector<8x32xf32>
    %cst_24 = arith.constant 1.000000e+00 : f32
    %68 = vector.broadcast %cst_24 : f32 to vector<8x32xf32>
    %69 = arith.addf %68, %67 : vector<8x32xf32>
    %70 = arith.divf %68, %69 : vector<8x32xf32>
    %71 = vector.extract_strided_slice %52 {offsets = [0, 64], sizes = [8, 32], strides = [1, 1]} : vector<8x96xf32> to vector<8x32xf32>
    %72 = vector.extract_strided_slice %54 {offsets = [0, 64], sizes = [8, 32], strides = [1, 1]} : vector<8x96xf32> to vector<8x32xf32>
    %73 = arith.mulf %62, %72 : vector<8x32xf32>
    %74 = arith.addf %71, %73 : vector<8x32xf32>
    %75 = math.tanh %74 : vector<8x32xf32>
    %cst_25 = arith.constant 1.000000e+00 : f32
    %76 = vector.broadcast %cst_25 : f32 to vector<8x32xf32>
    %77 = arith.subf %76, %70 : vector<8x32xf32>
    %78 = arith.mulf %77, %75 : vector<8x32xf32>
    %79 = arith.mulf %70, %48 : vector<8x32xf32>
    %80 = arith.addf %78, %79 : vector<8x32xf32>
    %c0_26 = arith.constant 0 : index
    %c0_27 = arith.constant 0 : index
    %81 = vector.load %arg5[%c0_26, %c0_27] : memref<8x32xf32, #tpu.memory_space<vmem>>, vector<8x32xf32>
    tpu.vector_store %arg5[%c0_26, %c0_27], %80 {strides = array<i32>} : memref<8x32xf32, #tpu.memory_space<vmem>>, vector<8x32xf32>,
    %c4_i32_28 = arith.constant 4 : i32
    %82 = arith.muli %arg0, %c4_i32_28 : i32
    %83 = arith.addi %82, %c1_i32 : i32
    %84 = vector.broadcast %83 : i32 to vector<8x1xi32>
    %85 = arith.cmpi eq, %4, %84 : vector<8x1xi32>
    %c0_29 = arith.constant 0 : index
    %c0_30 = arith.constant 0 : index
    %86 = vector.load %arg4[%c0_29, %c0_30] : memref<8x32xf32, #tpu.memory_space<vmem>>, vector<8x32xf32>
    %87 = vector.shape_cast %85 : vector<8x1xi1> to vector<8x1xi1>
    %88 = vector.broadcast %87 : vector<8x1xi1> to vector<8x32xi1>
    %89 = arith.select %88, %80, %86 : vector<8x32xi1>, vector<8x32xf32>
    %c0_31 = arith.constant 0 : index
    %c0_32 = arith.constant 0 : index
    %90 = vector.load %arg4[%c0_31, %c0_32] : memref<8x32xf32, #tpu.memory_space<vmem>>, vector<8x32xf32>
    tpu.vector_store %arg4[%c0_31, %c0_32], %89 {strides = array<i32>} : memref<8x32xf32, #tpu.memory_space<vmem>>, vector<8x32xf32>,
    %c2_i32 = arith.constant 2 : i32
    %c0_33 = arith.constant 0 : index
    %c0_34 = arith.constant 0 : index
    %91 = vector.load %arg5[%c0_33, %c0_34] : memref<8x32xf32, #tpu.memory_space<vmem>>, vector<8x32xf32>
    %92 = arith.index_cast %c2_i32 : i32 to index
    %c0_35 = arith.constant 0 : index
    %c0_36 = arith.constant 0 : index
    %93 = vector.load %arg1[%92, %c0_35, %c0_36] : memref<4x8x96xbf16, #tpu.memory_space<vmem>>, vector<1x8x96xbf16>
    %94 = vector.shape_cast %93 : vector<1x8x96xbf16> to vector<8x96xbf16>
    %95 = arith.extf %94 : vector<8x96xbf16> to vector<8x96xf32>
    %96 = arith.truncf %91 : vector<8x32xf32> to vector<8x32xbf16>
    %cst_37 = arith.constant dense<0.000000e+00> : vector<8x96xf32>
    %97 = tpu.matmul %96, %3, %cst_37 {dimension_numbers = #tpu.dot_dimension_numbers<[1], [0], [0], [1], [0, 0, 1, 1], [], []>} : vector<8x32xbf16>, vector<32x96xbf16>, vector<8x96xf32> -> vector<8x96xf32>
    %98 = vector.extract_strided_slice %95 {offsets = [0, 0], sizes = [8, 32], strides = [1, 1]} : vector<8x96xf32> to vector<8x32xf32>
    %99 = vector.extract_strided_slice %97 {offsets = [0, 0], sizes = [8, 32], strides = [1, 1]} : vector<8x96xf32> to vector<8x32xf32>
    %100 = arith.addf %98, %99 : vector<8x32xf32>
    %101 = arith.negf %100 : vector<8x32xf32>
    %102 = math.exp %101 : vector<8x32xf32>
    %cst_38 = arith.constant 1.000000e+00 : f32
    %103 = vector.broadcast %cst_38 : f32 to vector<8x32xf32>
    %104 = arith.addf %103, %102 : vector<8x32xf32>
    %105 = arith.divf %103, %104 : vector<8x32xf32>
    %106 = vector.extract_strided_slice %95 {offsets = [0, 32], sizes = [8, 32], strides = [1, 1]} : vector<8x96xf32> to vector<8x32xf32>
    %107 = vector.extract_strided_slice %97 {offsets = [0, 32], sizes = [8, 32], strides = [1, 1]} : vector<8x96xf32> to vector<8x32xf32>
    %108 = arith.addf %106, %107 : vector<8x32xf32>
    %109 = arith.negf %108 : vector<8x32xf32>
    %110 = math.exp %109 : vector<8x32xf32>
    %cst_39 = arith.constant 1.000000e+00 : f32
    %111 = vector.broadcast %cst_39 : f32 to vector<8x32xf32>
    %112 = arith.addf %111, %110 : vector<8x32xf32>
    %113 = arith.divf %111, %112 : vector<8x32xf32>
    %114 = vector.extract_strided_slice %95 {offsets = [0, 64], sizes = [8, 32], strides = [1, 1]} : vector<8x96xf32> to vector<8x32xf32>
    %115 = vector.extract_strided_slice %97 {offsets = [0, 64], sizes = [8, 32], strides = [1, 1]} : vector<8x96xf32> to vector<8x32xf32>
    %116 = arith.mulf %105, %115 : vector<8x32xf32>
    %117 = arith.addf %114, %116 : vector<8x32xf32>
    %118 = math.tanh %117 : vector<8x32xf32>
    %cst_40 = arith.constant 1.000000e+00 : f32
    %119 = vector.broadcast %cst_40 : f32 to vector<8x32xf32>
    %120 = arith.subf %119, %113 : vector<8x32xf32>
    %121 = arith.mulf %120, %118 : vector<8x32xf32>
    %122 = arith.mulf %113, %91 : vector<8x32xf32>
    %123 = arith.addf %121, %122 : vector<8x32xf32>
    %c0_41 = arith.constant 0 : index
    %c0_42 = arith.constant 0 : index
    %124 = vector.load %arg5[%c0_41, %c0_42] : memref<8x32xf32, #tpu.memory_space<vmem>>, vector<8x32xf32>
    tpu.vector_store %arg5[%c0_41, %c0_42], %123 {strides = array<i32>} : memref<8x32xf32, #tpu.memory_space<vmem>>, vector<8x32xf32>,
    %c4_i32_43 = arith.constant 4 : i32
    %125 = arith.muli %arg0, %c4_i32_43 : i32
    %126 = arith.addi %125, %c2_i32 : i32
    %127 = vector.broadcast %126 : i32 to vector<8x1xi32>
    %128 = arith.cmpi eq, %4, %127 : vector<8x1xi32>
    %c0_44 = arith.constant 0 : index
    %c0_45 = arith.constant 0 : index
    %129 = vector.load %arg4[%c0_44, %c0_45] : memref<8x32xf32, #tpu.memory_space<vmem>>, vector<8x32xf32>
    %130 = vector.shape_cast %128 : vector<8x1xi1> to vector<8x1xi1>
    %131 = vector.broadcast %130 : vector<8x1xi1> to vector<8x32xi1>
    %132 = arith.select %131, %123, %129 : vector<8x32xi1>, vector<8x32xf32>
    %c0_46 = arith.constant 0 : index
    %c0_47 = arith.constant 0 : index
    %133 = vector.load %arg4[%c0_46, %c0_47] : memref<8x32xf32, #tpu.memory_space<vmem>>, vector<8x32xf32>
    tpu.vector_store %arg4[%c0_46, %c0_47], %132 {strides = array<i32>} : memref<8x32xf32, #tpu.memory_space<vmem>>, vector<8x32xf32>,
    %c3_i32 = arith.constant 3 : i32
    %c0_48 = arith.constant 0 : index
    %c0_49 = arith.constant 0 : index
    %134 = vector.load %arg5[%c0_48, %c0_49] : memref<8x32xf32, #tpu.memory_space<vmem>>, vector<8x32xf32>
    %135 = arith.index_cast %c3_i32 : i32 to index
    %c0_50 = arith.constant 0 : index
    %c0_51 = arith.constant 0 : index
    %136 = vector.load %arg1[%135, %c0_50, %c0_51] : memref<4x8x96xbf16, #tpu.memory_space<vmem>>, vector<1x8x96xbf16>
    %137 = vector.shape_cast %136 : vector<1x8x96xbf16> to vector<8x96xbf16>
    %138 = arith.extf %137 : vector<8x96xbf16> to vector<8x96xf32>
    %139 = arith.truncf %134 : vector<8x32xf32> to vector<8x32xbf16>
    %cst_52 = arith.constant dense<0.000000e+00> : vector<8x96xf32>
    %140 = tpu.matmul %139, %3, %cst_52 {dimension_numbers = #tpu.dot_dimension_numbers<[1], [0], [0], [1], [0, 0, 1, 1], [], []>} : vector<8x32xbf16>, vector<32x96xbf16>, vector<8x96xf32> -> vector<8x96xf32>
    %141 = vector.extract_strided_slice %138 {offsets = [0, 0], sizes = [8, 32], strides = [1, 1]} : vector<8x96xf32> to vector<8x32xf32>
    %142 = vector.extract_strided_slice %140 {offsets = [0, 0], sizes = [8, 32], strides = [1, 1]} : vector<8x96xf32> to vector<8x32xf32>
    %143 = arith.addf %141, %142 : vector<8x32xf32>
    %144 = arith.negf %143 : vector<8x32xf32>
    %145 = math.exp %144 : vector<8x32xf32>
    %cst_53 = arith.constant 1.000000e+00 : f32
    %146 = vector.broadcast %cst_53 : f32 to vector<8x32xf32>
    %147 = arith.addf %146, %145 : vector<8x32xf32>
    %148 = arith.divf %146, %147 : vector<8x32xf32>
    %149 = vector.extract_strided_slice %138 {offsets = [0, 32], sizes = [8, 32], strides = [1, 1]} : vector<8x96xf32> to vector<8x32xf32>
    %150 = vector.extract_strided_slice %140 {offsets = [0, 32], sizes = [8, 32], strides = [1, 1]} : vector<8x96xf32> to vector<8x32xf32>
    %151 = arith.addf %149, %150 : vector<8x32xf32>
    %152 = arith.negf %151 : vector<8x32xf32>
    %153 = math.exp %152 : vector<8x32xf32>
    %cst_54 = arith.constant 1.000000e+00 : f32
    %154 = vector.broadcast %cst_54 : f32 to vector<8x32xf32>
    %155 = arith.addf %154, %153 : vector<8x32xf32>
    %156 = arith.divf %154, %155 : vector<8x32xf32>
    %157 = vector.extract_strided_slice %138 {offsets = [0, 64], sizes = [8, 32], strides = [1, 1]} : vector<8x96xf32> to vector<8x32xf32>
    %158 = vector.extract_strided_slice %140 {offsets = [0, 64], sizes = [8, 32], strides = [1, 1]} : vector<8x96xf32> to vector<8x32xf32>
    %159 = arith.mulf %148, %158 : vector<8x32xf32>
    %160 = arith.addf %157, %159 : vector<8x32xf32>
    %161 = math.tanh %160 : vector<8x32xf32>
    %cst_55 = arith.constant 1.000000e+00 : f32
    %162 = vector.broadcast %cst_55 : f32 to vector<8x32xf32>
    %163 = arith.subf %162, %156 : vector<8x32xf32>
    %164 = arith.mulf %163, %161 : vector<8x32xf32>
    %165 = arith.mulf %156, %134 : vector<8x32xf32>
    %166 = arith.addf %164, %165 : vector<8x32xf32>
    %c0_56 = arith.constant 0 : index
    %c0_57 = arith.constant 0 : index
    %167 = vector.load %arg5[%c0_56, %c0_57] : memref<8x32xf32, #tpu.memory_space<vmem>>, vector<8x32xf32>
    tpu.vector_store %arg5[%c0_56, %c0_57], %166 {strides = array<i32>} : memref<8x32xf32, #tpu.memory_space<vmem>>, vector<8x32xf32>,
    %c4_i32_58 = arith.constant 4 : i32
    %168 = arith.muli %arg0, %c4_i32_58 : i32
    %169 = arith.addi %168, %c3_i32 : i32
    %170 = vector.broadcast %169 : i32 to vector<8x1xi32>
    %171 = arith.cmpi eq, %4, %170 : vector<8x1xi32>
    %c0_59 = arith.constant 0 : index
    %c0_60 = arith.constant 0 : index
    %172 = vector.load %arg4[%c0_59, %c0_60] : memref<8x32xf32, #tpu.memory_space<vmem>>, vector<8x32xf32>
    %173 = vector.shape_cast %171 : vector<8x1xi1> to vector<8x1xi1>
    %174 = vector.broadcast %173 : vector<8x1xi1> to vector<8x32xi1>
    %175 = arith.select %174, %166, %172 : vector<8x32xi1>, vector<8x32xf32>
    %c0_61 = arith.constant 0 : index
    %c0_62 = arith.constant 0 : index
    %176 = vector.load %arg4[%c0_61, %c0_62] : memref<8x32xf32, #tpu.memory_space<vmem>>, vector<8x32xf32>
    tpu.vector_store %arg4[%c0_61, %c0_62], %175 {strides = array<i32>} : memref<8x32xf32, #tpu.memory_space<vmem>>, vector<8x32xf32>,
    %c4_i32_63 = arith.constant 4 : i32
    return
  }
  func.func @transform_0(%arg0: i32) -> (i32, i32, i32) {
    %c0_i32 = arith.constant 0 : i32
    %c0_i32_0 = arith.constant 0 : i32
    %c0_i32_1 = arith.constant 0 : i32
    return %arg0, %c0_i32, %c0_i32_0 : i32, i32, i32
  }
  func.func @transform_2(%arg0: i32) -> (i32, i32) {
    %c0_i32 = arith.constant 0 : i32
    %c0_i32_0 = arith.constant 0 : i32
    %c0_i32_1 = arith.constant 0 : i32
    return %c0_i32, %c0_i32_0 : i32, i32
  }
  func.func @transform_3(%arg0: i32) -> (i32, i32) {
    %c0_i32 = arith.constant 0 : i32
    %c0_i32_0 = arith.constant 0 : i32
    %c0_i32_1 = arith.constant 0 : i32
    return %c0_i32, %c0_i32_0 : i32, i32
  }
}

</mosaic_0001>

<bundles_post_ra>
// kernel: tpu_custom_call.1
= control target key start
LH: loop header
LB: loop body
LE: loop exit
PB: predicated region body
PF: predicated region fallthrough
CT: control target
= control target key end

     0   :  { %8 = vsyncpa [#allocation6], 0  ;;  %s1182_s0 = inlined_call_operand.hbm [shape: bf16[8,8,96], index: 0, kind: input, shape index: {}]   ;;  %s1183_s1 = inlined_call_operand.hbm [shape: bf16[32,96], index: 1, kind: input, shape index: {}]   ;;  %s1184_s2 = inlined_call_operand.vmem [shape: s32[8,1], index: 2, kind: input, shape index: {}]   ;;  %s1185_s3 = inlined_call_operand.hbm [shape: f32[8,32], index: 3, kind: output, shape index: {}]  }
   0x1   :  { %10 = vsyncpa [#allocation6 + $0x1], 0 }
   0x2   :  { %11 = vsyncpa [#allocation7], 0  ;;  %s954_s12 = smov 0   ;;  %s956_s13 = smov 0  }
   0x3   :  { %s958_s14 = smov 0   ;;  %s960_s15 = smov 0  }
   0x4 LB: > { %s973_s16 = sadd.s32 4294967295, %s920_s15   ;;  %s976_s17 = sadd.s32 1, %s920_s15   ;;  %s920_s15 = sphi %s960_s15, %s1192_s15   ;;  %s916_s14 = sphi %s958_s14, %s1191_s14   ;;  %s912_s13 = sphi %s956_s13, %s1190_s13   ;;  %s908_s12 = sphi %s954_s12, %s1189_s12  }
   0x5   : > { %s21_s18 = ssub.s32 %s920_s15, %s976_s17  ;;  %s24_s19 = sadd.s32 1, %s916_s14 }
   0x6   : > { %p22_p0 = scmp.eq.s32.totalorder %s21_s18, 0  ;;  %p31_p1 = scmp.ne.s32.totalorder %s916_s14, %s912_s13 }
   0x7   : > { %p32_p2 = scmp.eq.s32.totalorder %s920_s15, 0  ;;  %p37_p3 = scmp.ne.s32.totalorder %s912_s13, %s908_s12 }
   0x8   : > { %s986_s20 = scalar_select %p22_p0, %s916_s14, %s24_s19  }
   0x9   : > { %p33_p4 = por %p32_p2, %p31_p1  ;;  %p38_p5 = scmp.eq.s32.totalorder %s973_s16, 0 }
   0xa   : > { %p730_p6 = scmp.lt.s32.totalorder %s920_s15, 2  ;;  %s106_s22 = sand.u32 1, %s916_s14  }
   0xb   : > { %p990_p7 = por %p38_p5, %p37_p3  ;;  %s652_s23 = sshll.u32 %s106_s22, 4 }
   0xc   : > { %s675_s24 = sshll.u32 %s920_s15, 8  ;;  %s110_s28 = scalar_lea.vmem [#allocation5], %s652_s23 }
   0xd   : > { %s999_s27 = scalar_lea.hbm %s1182_s0, %s675_s24  ;;  %s117_s29 = sshll.u32 %s110_s28, 4  ;;  %s1001_s29 = int_to_ptr.vmem [resolvable:$true] %s117_s29 }
   0xe   : > { %p1003_p8 = pnand %p730_p6, %p33_p4  ;;  %s1008_s4 = scalar_lea.sflag [#allocation6], %s106_s22 }
   0xf   : > { %s802_s5 = scalar_lea.hbm %s999_s27, 256  ;;  %s807_s8 = scalar_lea.hbm %s1182_s0, 512 }
  0x10   : > { %p803_p10 = scmp.ne.s32.totalorder %s999_s27, %s802_s5  ;;  %p804_p11 = pneg %p1003_p8 }
  0x11   : > { %p808_p0 = scmp.lt.u32.totalorder %s999_s27, %s1182_s0  ;;  %p809_p1 = scmp.lt.u32.totalorder %s807_s8, %s802_s5 }
  0x12   : > { %p805_p12 = pnand %p804_p11, %p803_p10  ;;  %p811_p3 = scmp.lt.u32.totalorder %s802_s5, %s999_s27 }
  0x13   : > { %p810_p2 = por %p809_p1, %p808_p0 }
  0x14   : > { %p806_p13 = pneg %p805_p12 }
  0x15   : > { %p812_p4 = por %p811_p3, %p810_p2 }
  0x17   : > { %p813_p5 = pnand %p812_p4, %p806_p13 }
  0x19   : > { %816 = shalt.err (!%p813_p5)
}
  0x1a   : > { %s817_s11 = scalar_lea.vmem %s1001_s29, 256  ;;  %s922_s12 = smov [#allocation5]  }
  0x1b   : > { %p818_p6 = scmp.ne.s32.totalorder %s1001_s29, %s817_s11  ;;  %s822_s18 = sshll.u32 %s922_s12, 4  ;;  %s823_s18 = int_to_ptr.vmem [resolvable:$false] %s822_s18 }
  0x1c   : > { %s824_s19 = scalar_lea.vmem %s823_s18, 512  ;;  %p825_p9 = scmp.lt.s32.totalorder %s1001_s29, %s823_s18 }
  0x1d   : > { %p820_p10 = pnand %p818_p6, %p804_p11  ;;  %p826_p0 = scmp.lt.s32.totalorder %s824_s19, %s817_s11 }
  0x1f   : > { %p821_p12 = pneg %p820_p10  ;;  %p827_p1 = por %p826_p0, %p825_p9 }
  0x21   : > { %p828_p2 = pnand %p827_p1, %p821_p12 }
  0x23   : > { %831 = shalt.err (!%p828_p2)
}
  0x24   : > { %s923_s22 = smov 64   ;;  %s924_s23 = smov 4  }
  0x25   : > { %729 = dma.hbm_to_vmem [thread:$0]  (!%p1003_p8), %s999_s27, 256, %s1001_s29, %s1008_s4, %s923_s22, %s923_s22, %s924_s23  }
  0x26   : > { %p125_p11 = scmp.lt.s32.totalorder %s920_s15, 3  ;;  %p1188_p13 = scmp.ge.s32.totalorder %s920_s15, 1 }
  0x28   : > { %p126_p3 = pnand %p1188_p13, %p125_p11 }
  0x29   : > { %s131_s24 = sand.u32 (!%p126_p3), 1, %s912_s13  }
  0x2a   : > { %129 = sbr.rel (%p126_p3) target bundleno = 3029 (0xbd5), region = 28  ;;  %s1040_s25 = sshll.u32 (!%p126_p3), %s131_s24, 4 }
  0x2b   : > { %s132_s26 = scalar_lea.sflag (!%p126_p3), [#allocation6], %s131_s24  ;;  %s135_s28 = scalar_lea.vmem (!%p126_p3), [#allocation5], %s1040_s25 }
  0x31   : > { %897 = dma.done.wait (%p990_p7), %s132_s26, 256  }
  0x32   : > { %899 = vsyncadd (%p990_p7), %s132_s26, 4294967040  ;;  %p657_p9 = scmp.ne.s32.totalorder %s973_s16, 0 }
  0x33   : > { %vm157_vm0 = vcmask (!%p657_p9), 261120   ;;  %v925_v0 = vmov (!%p657_p9), 0.0   ;;  %s926_s15 = smov (!%p657_p9), [#allocation3]   ;;  %s832_s4 = scalar_lea.hbm (!%p657_p9), %s1183_s1, 256 }
  0x34   : > { %156 = sbr.rel (%p657_p9) target bundleno = 71 (0x47), region = 36  ;;  %158 = vst.msk [vmem:[#allocation2] sm:$0xff] (!%p657_p9), %vm157_vm0, %v925_v0  ;;  %159 = vst.msk [vmem:[#allocation8] sm:$0xff] (!%p657_p9), %vm157_vm0, %v925_v0  ;;  %s167_s27 = sshll.u32 (!%p657_p9), %s926_s15, 4  ;;  %s168_s27 = int_to_ptr.vmem [resolvable:$true] %s167_s27 }
  0x35   : > { %p833_p8 = scmp.ne.s32.totalorder (!%p657_p9), %s1183_s1, %s832_s4  ;;  %p836_p7 = scmp.lt.u32.totalorder (!%p657_p9), %s832_s4, %s1183_s1 }
  0x37   : > { %p838_p4 = pnand (!%p657_p9), %p836_p7, %p833_p8 }
  0x3b   : > { %841 = shalt.err (!%p838_p4)  }
  0x3c   : > { %s842_s8 = scalar_lea.vmem %s168_s27, 256  ;;  %p847_p6 = scmp.lt.s32.totalorder %s168_s27, %s168_s27 }
  0x3d   : > { %p843_p5 = scmp.ne.s32.totalorder %s168_s27, %s842_s8  ;;  %p848_p10 = scmp.lt.s32.totalorder %s842_s8, %s842_s8 }
  0x3f   : > { %p849_p12 = por %p848_p10, %p847_p6 }
  0x41   : > { %p850_p0 = pnand %p849_p12, %p843_p5 }
  0x43   : > { %853 = shalt.err (!%p850_p0)  }
  0x44   : > { %170 = dma.hbm_to_vmem [thread:$0]  %s1183_s1, 256, %s168_s27, [#allocation4] }
  0x45   : > { %900 = dma.done.wait [#allocation4], 256 }
  0x46   : > { %901 = vsyncadd [#allocation4], 4294967040 }
  0x47 PF: > { %v175_v1 = vld [vmem:[#allocation3] sm:$0xff]  ;;  %v927_v2 = vmov 0.0   ;;  %vm928_vm1 = vmmov 0   ;;  %v178_v3 = vld [vmem:[#allocation2] sm:$0xff]  ;;  %v176_v4 = vld [vmem:[#allocation3 + $0x8] sm:$0xff]  ;;  %vm182_vm2 = vcmask 261120  }
  0x48   : > { %688 = vmatprep.subr.bf16.mxu0 %v927_v2  ;;  %692 = vmatprep.mubr.msk.bf16.mxu0 %vm928_vm1, %v927_v2  ;;  %v181_v5 = vpack.c.bf16 %v178_v3, %v178_v3  ;;  %s929_s11 = smov 64   ;;  %v179_v10 = vld [vmem:[%s135_s28] sm:$0xff]   ;;  %s930_s12 = smov 96   ;;  %v1090_v59 = vld [vmem:[%s135_s28 + $0x8] sm:$0xff]  }
  0x49   : > { %689 = vmatpush3.bf16.msra.mxu0 %v175_v1  ;;  %696 = vmatprep.subr.bf16.mxu1 %v927_v2  ;;  %v180_v11 = vunpack.c.l.bf16 %v179_v10  ;;  %s931_s18 = smov 32   ;;  %v283_v35 = vunpack.c.h.bf16 %v179_v10  ;;  %v385_v60 = vunpack.c.l.bf16 %v1090_v59  ;;  %s1100_s23 = sshll.u32 %s973_s16, 2 }
  0x4a   : > { %690 = vmatprep.subr.bf16.mxu0 %v927_v2  ;;  %697 = vmatpush3.bf16.msra.mxu1 %v175_v1  ;;  %s363_s24 = sadd.s32 1, %s1100_s23  ;;  %s465_s25 = sadd.s32 2, %s1100_s23 }
  0x4b   : > { %698 = vmatprep.subr.bf16.mxu1 %v927_v2  ;;  %700 = vmatprep.mubr.msk.bf16.mxu1 %vm928_vm1, %v927_v2  ;;  %s567_s26 = sadd.s32 3, %s1100_s23  ;;  %s933_s28 = smov [#allocation8]  }
  0x4c   : > { %s593_s15 = sshll.u32 %s933_s28, 4  ;;  %p731_p1 = scmp.eq.s32.totalorder %s973_s16, 1  ;;  %s594_s15 = int_to_ptr.vmem [resolvable:$true] %s593_s15 }
  0x4d   : > { %691 = vmatpush3.bf16.msra.mxu0 %v176_v4  ;;  %s854_s27 = scalar_lea.vmem %s594_s15, 128  ;;  %p861_p3 = scmp.lt.s32.totalorder %s594_s15, %s594_s15 }
  0x4e   : > { %699 = vmatpush3.bf16.msra.mxu1 %v176_v4  ;;  %704 = vmatprep.subr.bf16.mxu0 %v927_v2  ;;  %p855_p2 = scmp.ne.s32.totalorder %s594_s15, %s854_s27  ;;  %p862_p9 = scmp.lt.s32.totalorder %s854_s27, %s854_s27 }
  0x4f   : > { %712 = vmatprep.subr.bf16.mxu1 %v927_v2 }
  0x50   : > { %693 = vmatmul.mubr.msk.bf16.vlgmr.msra.gmra.mrb[0].mxu0 %vm182_vm2, %v181_v5  ;;  %v932_v5 = vmov 0   ;;  %p856_p11 = pnand %p855_p2, %p731_p1  ;;  %p863_p8 = por %p862_p9, %p861_p3 }
  0x51   : > { %705 = vmatpush3.bf16.msra.mxu0 %v175_v1  ;;  %708 = vmatprep.mubr.msk.bf16.mxu0 %vm928_vm1, %v927_v2 }
  0x52   : > { %706 = vmatprep.subr.bf16.mxu0 %v927_v2  ;;  %776 = vset.pattern.permute.xlu1 %v932_v5  ;;  %p857_p13 = pneg %p856_p11 }
  0x53   : > { %777 = vset.pattern.permute.xlu0 %v932_v5 }
  0x54   : > { %p864_p7 = pnand %p863_p8, %p857_p13 }
  0x55   : > { %707 = vmatpush3.bf16.msra.mxu0 %v176_v4 }
 0x123   : > { %v220_v6 = vpop.f32.mrb[0].mxu0 }
 0x124   : > { %234 = vrot.lane.b32.xlu0 %v220_v6, %s929_s11  ;;  %v694_v7 = vpop.f32.mrb[1].mxu0  ;;  %v226_v12 = vadd.f32 %v220_v6, %v180_v11  ;;  %v262_v6 = vstv %s1100_s23 }
 0x125   : > { %v223_v8 = vpop.f32.mrb[2].mxu0 }
 0x126   : > { %v695_v9 = vpop.f32.mrb[3].mxu0  ;;  %v659_v13 = vmul.f32 -1.442695, %v226_v12 }
 0x128   : > { %778 = vpow2.f32 %v659_v13 }
 0x132   : > { %v779_v14 = vpop.eup %778 }
 0x133   : > { %v230_v15 = vadd.f32 1.0, %v779_v14 }
 0x135   : > { %780 = vrcp.f32 %v230_v15 }
 0x13f   : > { %v781_v16 = vpop.eup %780 }
 0x140   : > { %v244_v23 = vsub.f32 1.0, %v781_v16 }
 0x196   : > { %v235_v17 = vpop.permute.xlu0 %234 }
 0x197   : > { %v237_v18 = vmul.f32 %v781_v16, %v235_v17  ;;  %v364_v17 = vstv %s363_s24 }
 0x199   : > { %239 = vrot.lane.b32.xlu0 %v237_v18, %s929_s11  ;;  %v264_v18 = vld [vmem:[#allocation8] sm:$0xff] }
 0x20b   : > { %v240_v19 = vpop.permute.xlu0 %239 }
 0x20c   : > { %v242_v20 = vadd.f32 %v240_v19, %v180_v11 }
 0x20e   : > { %782 = vtanh.f32 %v242_v20 }
 0x218   : > { %v783_v21 = vpop.eup %782 }
 0x219   : > { %246 = vrot.lane.b32.xlu1 %v783_v21, %s930_s12 }
 0x21d   : > { %251 = vrot.lane.b32.xlu1 %v178_v3, %s931_s18 }
 0x28b   : > { %v247_v22 = vpop.permute.xlu1 %246 }
 0x28c   : > { %v249_v25 = vmul.f32 %v247_v22, %v244_v23 }
 0x28f   : > { %v252_v24 = vpop.permute.xlu1 %251 }
 0x290   : > { %v254_v26 = vmul.f32 %v781_v16, %v252_v24 }
 0x292   : > { %v1070_v27 = vadd.f32 %v254_v26, %v249_v25 }
 0x294   : > { %257 = vrot.lane.b32.xlu0 %v1070_v27, %s930_s12 }
 0x306   : > { %v258_v28 = vpop.permute.xlu0 %257 }
 0x307   : > { %260 = vst.msk [vmem:[#allocation2] sm:$0xff] %vm182_vm2, %v258_v28 }
 0x30e   : > { %v280_v29 = vld [vmem:[#allocation2] sm:$0xff] }
 0x30f   : > { %v284_v30 = vpack.c.bf16 %v280_v29, %v280_v29 }
 0x311   : > { %701 = vmatmul.mubr.msk.bf16.vlgmr.msra.gmra.mrb[0].mxu1 %vm182_vm2, %v284_v30 }
 0x312   : > { %713 = vmatpush3.bf16.msra.mxu1 %v175_v1  ;;  %716 = vmatprep.mubr.msk.bf16.mxu1 %vm928_vm1, %v927_v2 }
 0x313   : > { %714 = vmatprep.subr.bf16.mxu1 %v927_v2 }
 0x316   : > { %715 = vmatpush3.bf16.msra.mxu1 %v176_v4  ;;  %v1097_v4 = vld [vmem:[%s1184_s2] sm:$0xff] }
 0x317   : > { %vm263_vm3 = vcmp.eq.s32.totalorder %v1097_v4, %v262_v6  ;;  %vm365_vm4 = vcmp.eq.s32.totalorder %v1097_v4, %v364_v17 }
 0x318   : > { %v265_v7 = vsel %vm263_vm3, 1, %v932_v5  ;;  %v367_v19 = vsel %vm365_vm4, 1, %v932_v5 }
 0x3e4   : > { %v322_v31 = vpop.f32.mrb[0].mxu1 }
 0x3e5   : > { %336 = vrot.lane.b32.xlu1 %v322_v31, %s929_s11  ;;  %v702_v32 = vpop.f32.mrb[1].mxu1  ;;  %v328_v36 = vadd.f32 %v322_v31, %v283_v35 }
 0x3e6   : > { %v325_v33 = vpop.f32.mrb[2].mxu1 }
 0x3e7   : > { %v703_v34 = vpop.f32.mrb[3].mxu1  ;;  %v663_v37 = vmul.f32 -1.442695, %v328_v36  ;;  %v466_v33 = vstv %s465_s25 }
 0x3e8   : > { %vm467_vm7 = vcmp.eq.s32.totalorder %v1097_v4, %v466_v33 }
 0x3e9   : > { %784 = vpow2.f32 %v663_v37  ;;  %v469_v36 = vsel %vm467_vm7, 1, %v932_v5  ;;  %v487_v37 = vunpack.c.h.bf16 %v1090_v59 }
 0x3f3   : > { %v785_v38 = vpop.eup %784 }
 0x3f4   : > { %v332_v39 = vadd.f32 1.0, %v785_v38 }
 0x3f6   : > { %786 = vrcp.f32 %v332_v39 }
 0x400   : > { %v787_v40 = vpop.eup %786 }
 0x401   : > { %v346_v47 = vsub.f32 1.0, %v787_v40 }
 0x457   : > { %v337_v41 = vpop.permute.xlu1 %336 }
 0x458   : > { %v339_v42 = vmul.f32 %v787_v40, %v337_v41 }
 0x45a   : > { %341 = vrot.lane.b32.xlu0 %v339_v42, %s929_s11  ;;  %v568_v42 = vstv %s567_s26 }
 0x45b   : > { %vm569_vm8 = vcmp.eq.s32.totalorder %v1097_v4, %v568_v42 }
 0x45e   : > { %353 = vrot.lane.b32.xlu0 %v280_v29, %s931_s18 }
 0x4cc   : > { %v342_v43 = vpop.permute.xlu0 %341 }
 0x4cd   : > { %v344_v44 = vadd.f32 %v342_v43, %v283_v35 }
 0x4cf   : > { %788 = vtanh.f32 %v344_v44 }
 0x4d0   : > { %v354_v46 = vpop.permute.xlu0 %353 }
 0x4d1   : > { %v356_v49 = vmul.f32 %v787_v40, %v354_v46  ;;  %v571_v46 = vsel %vm569_vm8, 1, %v932_v5 }
 0x4d9   : > { %v789_v45 = vpop.eup %788 }
 0x4da   : > { %348 = vrot.lane.b32.xlu1 %v789_v45, %s930_s12 }
 0x54c   : > { %v349_v48 = vpop.permute.xlu1 %348 }
 0x54d   : > { %v351_v50 = vmul.f32 %v349_v48, %v346_v47 }
 0x54f   : > { %v1081_v51 = vadd.f32 %v356_v49, %v351_v50 }
 0x551   : > { %359 = vrot.lane.b32.xlu1 %v1081_v51, %s930_s12 }
 0x5c3   : > { %v360_v52 = vpop.permute.xlu1 %359 }
 0x5c4   : > { %362 = vst.msk [vmem:[#allocation2] sm:$0xff] %vm182_vm2, %v360_v52 }
 0x5cb   : > { %v382_v53 = vld [vmem:[#allocation2] sm:$0xff] }
 0x5cc   : > { %v386_v54 = vpack.c.bf16 %v382_v53, %v382_v53 }
 0x5ce   : > { %709 = vmatmul.mubr.msk.bf16.vlgmr.msra.gmra.mrb[4].mxu0 %vm182_vm2, %v386_v54 }
 0x6a1   : > { %v424_v55 = vpop.f32.mrb[4].mxu0 }
 0x6a2   : > { %438 = vrot.lane.b32.xlu0 %v424_v55, %s929_s11  ;;  %v710_v56 = vpop.f32.mrb[5].mxu0  ;;  %v430_v61 = vadd.f32 %v424_v55, %v385_v60 }
 0x6a3   : > { %v427_v57 = vpop.f32.mrb[6].mxu0 }
 0x6a4   : > { %v711_v58 = vpop.f32.mrb[7].mxu0  ;;  %v666_v62 = vmul.f32 -1.442695, %v430_v61 }
 0x6a6   : > { %790 = vpow2.f32 %v666_v62 }
 0x6b0   : > { %v791_v63 = vpop.eup %790 }
 0x6b1   : > { %v434_v0 = vadd.f32 1.0, %v791_v63 }
 0x6b3   : > { %792 = vrcp.f32 %v434_v0 }
 0x6bd   : > { %v793_v1 = vpop.eup %792 }
 0x6be   : > { %v448_v12 = vsub.f32 1.0, %v793_v1 }
 0x714   : > { %v439_v2 = vpop.permute.xlu0 %438 }
 0x715   : > { %v441_v3 = vmul.f32 %v793_v1, %v439_v2 }
 0x717   : > { %443 = vrot.lane.b32.xlu1 %v441_v3, %s929_s11 }
 0x71b   : > { %455 = vrot.lane.b32.xlu1 %v382_v53, %s931_s18 }
 0x71f   : > { %267 = vperm.xlu1 %776, %v265_v7  }
 0x789   : > { %v444_v8 = vpop.permute.xlu1 %443 }
 0x78a   : > { %v446_v9 = vadd.f32 %v444_v8, %v385_v60 }
 0x78c   : > { %794 = vtanh.f32 %v446_v9 }
 0x78d   : > { %v456_v11 = vpop.permute.xlu1 %455 }
 0x78e   : > { %v458_v14 = vmul.f32 %v793_v1, %v456_v11 }
 0x796   : > { %v795_v10 = vpop.eup %794 }
 0x797   : > { %450 = vrot.lane.b32.xlu0 %v795_v10, %s930_s12 }
 0x79e   : > { %v268_v20 = vpop.permute.xlu1 %267 }
 0x79f   : > { %vm269_vm5 = vcmp.eq.s32.totalorder %v268_v20, 1 }
 0x809   : > { %v451_v13 = vpop.permute.xlu0 %450 }
 0x80a   : > { %v453_v15 = vmul.f32 %v451_v13, %v448_v12 }
 0x80c   : > { %v1110_v16 = vadd.f32 %v458_v14, %v453_v15 }
 0x80e   : > { %461 = vrot.lane.b32.xlu0 %v1110_v16, %s930_s12 }
 0x812   : > { %271 = vrot.lane.b32.xlu0 %v264_v18, %s931_s18 }
 0x816   : > { %369 = vperm.xlu0 %777, %v367_v19  }
 0x880   : > { %v462_v21 = vpop.permute.xlu0 %461 }
 0x881   : > { %464 = vst.msk [vmem:[#allocation2] sm:$0xff] %vm182_vm2, %v462_v21 }
 0x884   : > { %v272_v22 = vpop.permute.xlu0 %271 }
 0x885   : > { %v274_v23 = vsel %vm269_vm5, %v1070_v27, %v272_v22 }
 0x886   : > { %276 = vrot.lane.b32.xlu1 %v274_v23, %s930_s12 }
 0x888   : > { %v484_v24 = vld [vmem:[#allocation2] sm:$0xff] }
 0x889   : > { %v488_v25 = vpack.c.bf16 %v484_v24, %v484_v24 }
 0x88b   : > { %717 = vmatmul.mubr.msk.bf16.vlgmr.msra.gmra.mrb[4].mxu1 %vm182_vm2, %v488_v25 }
 0x895   : > { %v370_v27 = vpop.permute.xlu0 %369 }
 0x896   : > { %vm371_vm6 = vcmp.eq.s32.totalorder %v370_v27, 1 }
 0x8f8   : > { %v277_v26 = vpop.permute.xlu1 %276 }
 0x8f9   : > { %279 = vst.msk [vmem:[#allocation8] sm:$0xff] %vm182_vm2, %v277_v26 }
 0x900   : > { %v366_v28 = vld [vmem:[#allocation8] sm:$0xff] }
 0x901   : > { %373 = vrot.lane.b32.xlu1 %v366_v28, %s931_s18 }
 0x95e   : > { %v526_v29 = vpop.f32.mrb[4].mxu1 }
 0x95f   : > { %540 = vrot.lane.b32.xlu0 %v526_v29, %s929_s11  ;;  %v718_v30 = vpop.f32.mrb[5].mxu1  ;;  %v532_v38 = vadd.f32 %v526_v29, %v487_v37 }
 0x960   : > { %v529_v31 = vpop.f32.mrb[6].mxu1 }
 0x961   : > { %v719_v32 = vpop.f32.mrb[7].mxu1  ;;  %v669_v39 = vmul.f32 -1.442695, %v532_v38 }
 0x963   : > { %796 = vpow2.f32 %v669_v39 }
 0x96d   : > { %v797_v40 = vpop.eup %796 }
 0x96e   : > { %v536_v41 = vadd.f32 1.0, %v797_v40 }
 0x970   : > { %798 = vrcp.f32 %v536_v41 }
 0x973   : > { %v374_v34 = vpop.permute.xlu1 %373 }
 0x974   : > { %v376_v35 = vsel %vm371_vm6, %v1081_v51, %v374_v34 }
 0x975   : > { %378 = vrot.lane.b32.xlu1 %v376_v35, %s930_s12 }
 0x979   : > { %471 = vperm.xlu1 %776, %v469_v36  }
 0x97a   : > { %v799_v43 = vpop.eup %798 }
 0x97b   : > { %v550_v58 = vsub.f32 1.0, %v799_v43 }
 0x9d1   : > { %v541_v44 = vpop.permute.xlu0 %540 }
 0x9d2   : > { %v543_v45 = vmul.f32 %v799_v43, %v541_v44 }
 0x9d4   : > { %545 = vrot.lane.b32.xlu1 %v543_v45, %s929_s11 }
 0x9d8   : > { %573 = vperm.xlu1 %776, %v571_v46  }
 0x9dc   : > { %557 = vrot.lane.b32.xlu1 %v484_v24, %s931_s18 }
 0x9e7   : > { %v379_v47 = vpop.permute.xlu1 %378 }
 0x9e8   : > { %381 = vst.msk [vmem:[#allocation8] sm:$0xff] %vm182_vm2, %v379_v47 }
 0x9ef   : > { %v468_v48 = vld [vmem:[#allocation8] sm:$0xff] }
 0x9f0   : > { %475 = vrot.lane.b32.xlu0 %v468_v48, %s931_s18 }
 0x9f8   : > { %v472_v49 = vpop.permute.xlu1 %471 }
 0x9f9   : > { %vm473_vm9 = vcmp.eq.s32.totalorder %v472_v49, 1 }
 0xa46   : > { %v546_v50 = vpop.permute.xlu1 %545 }
 0xa47   : > { %v548_v51 = vadd.f32 %v546_v50, %v487_v37 }
 0xa49   : > { %800 = vtanh.f32 %v548_v51 }
 0xa53   : > { %v801_v54 = vpop.eup %800 }
 0xa57   : > { %v574_v55 = vpop.permute.xlu1 %573 }
 0xa58   : > { %vm575_vm10 = vcmp.eq.s32.totalorder %v574_v55, 1 }
 0xa5b   : > { %v558_v59 = vpop.permute.xlu1 %557 }
 0xa5c   : > { %v560_v62 = vmul.f32 %v799_v43, %v558_v59 }
 0xa62   : > { %v476_v52 = vpop.permute.xlu0 %475 }
 0xa63   : > { %v478_v53 = vsel %vm473_vm9, %v1110_v16, %v476_v52 }
 0xa64   : > { %480 = vrot.lane.b32.xlu0 %v478_v53, %s930_s12 }
 0xa68   : > { %552 = vrot.lane.b32.xlu0 %v801_v54, %s930_s12 }
 0xad6   : > { %v481_v56 = vpop.permute.xlu0 %480 }
 0xad7   : > { %483 = vst.msk [vmem:[#allocation8] sm:$0xff] %vm182_vm2, %v481_v56 }
 0xada   : > { %v553_v57 = vpop.permute.xlu0 %552 }
 0xadb   : > { %v555_v60 = vmul.f32 %v553_v57, %v550_v58 }
 0xadd   : > { %v561_v63 = vadd.f32 %v560_v62, %v555_v60 }
 0xade   : > { %v570_v61 = vld [vmem:[#allocation8] sm:$0xff] }
 0xadf   : > { %577 = vrot.lane.b32.xlu0 %v570_v61, %s931_s18 }
 0xae3   : > { %563 = vrot.lane.b32.xlu0 %v561_v63, %s930_s12 }
 0xb51   : > { %v578_v0 = vpop.permute.xlu0 %577 }
 0xb52   : > { %v580_v1 = vsel %vm575_vm10, %v561_v63, %v578_v0 }
 0xb53   : > { %582 = vrot.lane.b32.xlu1 %v580_v1, %s930_s12 }
 0xb55   : > { %v564_v2 = vpop.permute.xlu0 %563 }
 0xb56   : > { %566 = vst.msk [vmem:[#allocation2] sm:$0xff] %vm182_vm2, %v564_v2 }
 0xbc5   : > { %v583_v3 = vpop.permute.xlu1 %582 }
 0xbc6   : > { %585 = vst.msk [vmem:[#allocation8] sm:$0xff] %vm182_vm2, %v583_v3 }
 0xbc7   : > { %867 = shalt.err (!%p864_p7)
}
 0xbc8   : > { %s868_s4 = scalar_lea.hbm %s1185_s3, 128 }
 0xbc9   : > { %p869_p4 = scmp.ne.s32.totalorder %s1185_s3, %s868_s4  ;;  %p874_p10 = scmp.lt.u32.totalorder %s868_s4, %s1185_s3 }
 0xbcb   : > { %p870_p5 = pnand %p869_p4, %p731_p1 }
 0xbcd   : > { %p871_p6 = pneg %p870_p5 }
 0xbcf   : > { %p876_p12 = pnand %p874_p10, %p871_p6 }
 0xbd1   : > { %879 = shalt.err (!%p876_p12)
}
 0xbd2   : > { %723 = dma.vmem_to_hbm [thread:$0]  (%p731_p1), %s594_s15, 128, %s1185_s3, [#allocation7]  }
 0xbd3   : > { %903 = dma.done.wait (%p731_p1), [#allocation7], 128  }
 0xbd4   : > { %905 = vsyncadd (%p731_p1), [#allocation7], 4294967168 }
 0xbd5 PF: > { %p14_p0 = scmp.ge.s32.totalorder %s976_s17, 4   ;;  %s1189_s12 = smov %s912_s13 }
 0xbd6   : > { %s1190_s13 = smov %s916_s14  ;;  %s1191_s14 = smov %s986_s20 }
 0xbd7   : > { %s1192_s15 = smov %s976_s17  ;;  %16 = sbr.rel (!%p14_p0) target bundleno = 4 (0x4), region = 76 }
 0xbde   :  { %606 = vsyncpa [#allocation6], 1 }
 0xbdf   :  { %608 = vsyncpa [#allocation6 + $0x1], 1 }
 0xbe0   :  { %609 = vsyncpa [#allocation7], 1 }
 0xbe1   :  { %611 = vsyncpa [#allocation7 + $0x1], 1 }
 0xbe2   :  { %612 = vsyncmov [#allocation4] }
 0xbe5   :  { %s613_s16 = vpop.sfrf %612 }
 0xbe6   :  { %p674_p1 = scmp.ne.s32.totalorder %s613_s16, 0 }
 0xbe8   :  { %617 = shalt.err (%p674_p1)  }

</bundles_post_ra>
